<compile_context>
chip_gen: v5e
topology: v5e:2x2
jax: 0.10.0
libtpu: 0.0.40
codegen_flags: <defaults>
</compile_context>

<pallas_src>
import functools

import jax
import jax.numpy as jnp
from jax import lax
from jax.experimental import pallas as pl
from jax.experimental.pallas import tpu as pltpu


def _round_up(x, m):
    return ((x + m - 1) // m) * m


# ---------------------------------------------------------------------------
# Stage 1: xa = scaling * (dropout(x) @ A)   (rank columns only -> tiny)
# ---------------------------------------------------------------------------
def _xa_kernel(x_ref, a_ref, xa_ref, acc_ref, *, scaling):
    k = pl.program_id(1)
    nk = pl.num_programs(1)

    @pl.when(k == 0)
    def _():
        acc_ref[...] = jnp.zeros_like(acc_ref)

    acc_ref[...] += jnp.dot(x_ref[...], a_ref[...],
                            preferred_element_type=jnp.float32)

    @pl.when(k == nk - 1)
    def _():
        xa_ref[...] = (acc_ref[...] * scaling).astype(xa_ref.dtype)


# ---------------------------------------------------------------------------
# Stage 2, single K pass (tk == K_pad): no accumulator scratch at all.
# ---------------------------------------------------------------------------
def _fused_kernel_single_k(x_ref, wt_ref, b_ref, xa_ref, bmat_ref, o_ref):
    acc = jnp.dot(x_ref[...], wt_ref[...], preferred_element_type=jnp.float32)
    acc += jnp.dot(xa_ref[...], bmat_ref[...],
                   preferred_element_type=jnp.float32)
    acc += b_ref[...].astype(jnp.float32)
    o_ref[...] = acc.astype(o_ref.dtype)


# ---------------------------------------------------------------------------
# Stage 2, K tiled: f32 accumulator, bias folded into the k==0 init,
# LoRA second stage fused into the last-K finalize.
# ---------------------------------------------------------------------------
def _fused_kernel_multi_k(x_ref, wt_ref, b_ref, xa_ref, bmat_ref, o_ref,
                          acc_ref):
    k = pl.program_id(2)
    nk = pl.num_programs(2)

    @pl.when(k == 0)
    def _():
        acc_ref[...] = jnp.zeros_like(acc_ref) + b_ref[...].astype(jnp.float32)

    acc_ref[...] += jnp.dot(x_ref[...], wt_ref[...],
                            preferred_element_type=jnp.float32)

    @pl.when(k == nk - 1)
    def _():
        lora = jnp.dot(xa_ref[...], bmat_ref[...],
                       preferred_element_type=jnp.float32)
        o_ref[...] = (acc_ref[...] + lora).astype(o_ref.dtype)


# ---------------------------------------------------------------------------
# Tile selection: large lane-dense tiles within an explicit VMEM budget.
# ---------------------------------------------------------------------------
def _select_tiles(M, in_dim, out_dim, rank_pad, itemsize,
                  tm_max, tn_max, tk_max, vmem_budget):
    k_full = _round_up(in_dim, 128)

    tm = min(tm_max, _round_up(M, 8))
    tn = min(tn_max, _round_up(out_dim, 128))
    tk = _round_up(min(tk_max, k_full), 128)

    def footprint(tm_, tn_, tk_):
        per_step = (tm_ * tk_ * itemsize          # x tile
                    + tk_ * tn_ * itemsize        # W^T tile
                    + tm_ * tn_ * itemsize        # output tile
                    + tm_ * rank_pad * itemsize   # xa tile
                    + rank_pad * tn_ * itemsize   # B tile
                    + tn_ * itemsize)             # bias tile
        total = 2 * per_step                      # double-buffered pipeline
        if tk_ < k_full:                          # K tiled -> f32 accumulator
            total += tm_ * tn_ * 4
        return total

    def halve(v, minimum, quantum):
        return max(minimum, _round_up(v // 2, quantum))

    while footprint(tm, tn, tk) > vmem_budget:
        if tk > 512:
            tk = halve(tk, 512, 128)
        elif tn > 256:
            tn = halve(tn, 256, 128)
        elif tm > 128:
            tm = halve(tm, 128, 8)
        elif tk > 256:
            tk = halve(tk, 256, 128)
        else:
            break

    # v7x has 2 TensorCores: keep the parallel (M, N) grid >= 2 blocks when the
    # problem allows so one core does not idle (the reduction axis cannot be
    # sharded across cores).
    gm = -(-M // tm)
    gn = -(-_round_up(out_dim, 128) // tn)
    if gm * gn < 2 and tn >= 256 and (tn // 2) % 128 == 0:
        tn //= 2

    return tm, tn, tk, footprint(tm, tn, tk)


# ---------------------------------------------------------------------------
# Wrapper
# ---------------------------------------------------------------------------
def linear_with_lora(x, wt, b, a, bmat, *, alpha, rank,
                     tm_max=512, tn_max=1024, tk_max=4096,
                     vmem_budget_bytes=40 * 1024 * 1024):
    """Fused  y = x @ wt + b + (alpha/rank) * ((x @ a) @ bmat).

    x:    [..., in_dim]
    wt:   [in_dim, out_dim]   (nn.Linear weight, pre-transposed ONCE outside)
    b:    [out_dim]
    a:    [in_dim, rank]
    bmat: [rank, out_dim]
    """
    orig_shape = x.shape
    in_dim = orig_shape[-1]
    out_dim = wt.shape[1]
    assert wt.shape[0] == in_dim
    assert a.shape == (in_dim, rank)
    assert bmat.shape == (rank, out_dim)
    assert b.shape == (out_dim,)

    x2d = x.reshape(-1, in_dim)
    M = x2d.shape[0]
    rank_pad = _round_up(rank, 8)

    tm, tn, tk, est_bytes = _select_tiles(
        M, in_dim, out_dim, rank_pad, x.dtype.itemsize,
        tm_max, tn_max, tk_max, vmem_budget_bytes)

    M_pad = _round_up(M, tm)
    N_pad = _round_up(out_dim, tn)
    K_pad = _round_up(in_dim, tk)

    # Zero padding (exact: padded K lanes contribute 0; extra M rows / N cols
    # are sliced off after the kernel).
    if M_pad != M or K_pad != in_dim:
        x2d = jnp.pad(x2d, ((0, M_pad - M), (0, K_pad - in_dim)))
    if K_pad != in_dim or N_pad != out_dim:
        wt = jnp.pad(wt, ((0, K_pad - in_dim), (0, N_pad - out_dim)))
    if K_pad != in_dim or rank_pad != rank:
        a = jnp.pad(a, ((0, K_pad - in_dim), (0, rank_pad - rank)))
    if rank_pad != rank or N_pad != out_dim:
        bmat = jnp.pad(bmat, ((0, rank_pad - rank), (0, N_pad - out_dim)))
    if N_pad != out_dim:
        b = jnp.pad(b, ((0, N_pad - out_dim),))
    b2d = b.reshape(1, N_pad)

    scaling = float(alpha) / float(rank)
    grid_m = M_pad // tm
    grid_n = N_pad // tn
    grid_k = K_pad // tk

    # Explicit scoped-VMEM request: v5e default is only 16 MiB; cap well below
    # the 64 MiB physical VMEM of v7x.
    vmem_limit = int(min(56 * 1024 * 1024,
                         max(32 * 1024 * 1024, est_bytes * 3 // 2)))

    # ---- stage 1: xa = scaling * (dropout(x) @ A);  dropout = identity (eval) ----
    xa = pl.pallas_call(
        functools.partial(_xa_kernel, scaling=scaling),
        out_shape=jax.ShapeDtypeStruct((M_pad, rank_pad), x.dtype),
        grid_spec=pltpu.PrefetchScalarGridSpec(
            num_scalar_prefetch=0,
            grid=(grid_m, grid_k),
            in_specs=[
                pl.BlockSpec((tm, tk), lambda i, k: (i, k)),          # x
                pl.BlockSpec((tk, rank_pad), lambda i, k: (k, 0)),    # A
            ],
            out_specs=pl.BlockSpec((tm, rank_pad), lambda i, k: (i, 0)),
            scratch_shapes=[pltpu.VMEM((tm, rank_pad), jnp.float32)],
        ),
        compiler_params=pltpu.CompilerParams(
            dimension_semantics=("parallel", "arbitrary"),
            vmem_limit_bytes=vmem_limit),
    )(x2d, a)

    # ---- stage 2: fused base linear + bias + LoRA second stage ----
    if grid_k == 1:
        out2d = pl.pallas_call(
            _fused_kernel_single_k,
            out_shape=jax.ShapeDtypeStruct((M_pad, N_pad), x.dtype),
            grid_spec=pltpu.PrefetchScalarGridSpec(
                num_scalar_prefetch=0,
                grid=(grid_m, grid_n),
                in_specs=[
                    pl.BlockSpec((tm, tk), lambda i, j: (i, 0)),          # x
                    pl.BlockSpec((tk, tn), lambda i, j: (0, j)),          # W^T
                    pl.BlockSpec((1, tn), lambda i, j: (0, j)),           # bias
                    pl.BlockSpec((tm, rank_pad), lambda i, j: (i, 0)),    # xa
                    pl.BlockSpec((rank_pad, tn), lambda i, j: (0, j)),    # B
                ],
                out_specs=pl.BlockSpec((tm, tn), lambda i, j: (i, j)),
            ),
            compiler_params=pltpu.CompilerParams(
                dimension_semantics=("parallel", "parallel"),
                vmem_limit_bytes=vmem_limit),
        )(x2d, wt, b2d, xa, bmat)
    else:
        out2d = pl.pallas_call(
            _fused_kernel_multi_k,
            out_shape=jax.ShapeDtypeStruct((M_pad, N_pad), x.dtype),
            grid_spec=pltpu.PrefetchScalarGridSpec(
                num_scalar_prefetch=0,
                grid=(grid_m, grid_n, grid_k),
                in_specs=[
                    pl.BlockSpec((tm, tk), lambda i, j, k: (i, k)),        # x
                    pl.BlockSpec((tk, tn), lambda i, j, k: (k, j)),        # W^T
                    pl.BlockSpec((1, tn), lambda i, j, k: (0, j)),         # bias
                    pl.BlockSpec((tm, rank_pad), lambda i, j, k: (i, 0)),  # xa
                    pl.BlockSpec((rank_pad, tn), lambda i, j, k: (0, j)),  # B
                ],
                out_specs=pl.BlockSpec((tm, tn), lambda i, j, k: (i, j)),
                scratch_shapes=[pltpu.VMEM((tm, tn), jnp.float32)],
            ),
            compiler_params=pltpu.CompilerParams(
                dimension_semantics=("parallel", "parallel", "arbitrary"),
                vmem_limit_bytes=vmem_limit),
        )(x2d, wt, b2d, xa, bmat)

    out2d = out2d[:M, :out_dim]
    return out2d.reshape(*orig_shape[:-1], out_dim)


if __name__ == "__main__":
    key = jax.random.PRNGKey(0)
    keys = jax.random.split(key, 8)

    def ref_forward(x, w, b, a, bmat, scaling):
        hi = lax.Precision.HIGHEST
        base = jnp.matmul(x, w.T, precision=hi) + b
        lora = scaling * jnp.matmul(jnp.matmul(x, a, precision=hi), bmat,
                                    precision=hi)
        return base + lora

    # ---- test 1: shapes matching nn.Linear(32, 32), rank=4, alpha=8 ----
    batch, seq, in_dim, out_dim, rank, alpha = 2, 8, 32, 32, 4, 8
    x = jax.random.normal(keys[0], (batch, seq, in_dim), dtype=jnp.float32)
    w = jax.random.normal(keys[1], (out_dim, in_dim), dtype=jnp.float32) * 0.1
    b = jax.random.normal(keys[2], (out_dim,), dtype=jnp.float32) * 0.1
    a = jax.random.normal(keys[3], (in_dim, rank), dtype=jnp.float32) / jnp.sqrt(
        jnp.float32(rank))
    # Module __init__ sets B = 0 (LoRA output zero at init); use a nonzero B
    # here so the LoRA path of the kernel is actually exercised.
    bmat = jax.random.normal(keys[4], (rank, out_dim), dtype=jnp.float32) * 0.1

    wt = jnp.asarray(w.T)   # one-time pre-transpose, OFF the per-call path

    out = jax.block_until_ready(
        linear_with_lora(x, wt, b, a, bmat, alpha=alpha, rank=rank))
    ref = ref_forward(x, w, b, a, bmat, alpha / rank)
    assert out.shape == ref.shape
    assert jnp.allclose(out, ref, atol=1e-3, rtol=1e-3), "mismatch (test 1)"

    # ---- test 2: module's actual init (B = 0) and non-tile-aligned M ----
    x_odd = jax.random.normal(keys[5], (batch, 7, in_dim), dtype=jnp.float32)
    bzero = jnp.zeros((rank, out_dim), dtype=jnp.float32)
    out2 = jax.block_until_ready(
        linear_with_lora(x_odd, wt, b, a, bzero, alpha=alpha, rank=rank))
    ref2 = ref_forward(x_odd, w, b, a, bzero, alpha / rank)
    assert jnp.allclose(out2, ref2, atol=1e-3, rtol=1e-3), "mismatch (test 2)"

    # ---- test 3: force the K-tiled (multi-pass) kernel + padded out_dim ----
    in3, out3, rank3, alpha3 = 256, 192, 8, 16
    x3 = jax.random.normal(keys[6], (batch, seq, in3), dtype=jnp.float32)
    w3 = jax.random.normal(keys[7], (out3, in3), dtype=jnp.float32) * 0.05
    b3 = jax.random.normal(keys[2], (out3,), dtype=jnp.float32) * 0.05
    a3 = jax.random.normal(keys[0], (in3, rank3), dtype=jnp.float32) / jnp.sqrt(
        jnp.float32(rank3))
    bm3 = jax.random.normal(keys[1], (rank3, out3), dtype=jnp.float32) * 0.05
    out3v = jax.block_until_ready(
        linear_with_lora(x3, jnp.asarray(w3.T), b3, a3, bm3,
                         alpha=alpha3, rank=rank3, tk_max=128))
    ref3 = ref_forward(x3, w3, b3, a3, bm3, alpha3 / rank3)
    assert jnp.allclose(out3v, ref3, atol=1e-3, rtol=1e-3), \
        "mismatch (test 3, K-tiled)"

    print("KERNEL_OK")
</pallas_src>

<mosaic_0001>
module attributes {stable_mosaic.version = 11 : i64} {
  func.func @_xa_kernel(%arg0: i32, %arg1: i32, %arg2: memref<16x128xf32, #tpu.memory_space<vmem>>, %arg3: memref<128x8xf32, #tpu.memory_space<vmem>>, %arg4: memref<16x8xf32, #tpu.memory_space<vmem>>, %arg5: memref<16x8xf32, #tpu.memory_space<vmem>>) attributes {dimension_semantics = [#tpu.dimension_semantics<parallel>, #tpu.dimension_semantics<arbitrary>], iteration_bounds = array<i64: 1, 1>, scalar_prefetch = 0 : i64, scratch_operands = 1 : i64, tpu.core_type = #tpu.core_type<tc>, window_params = [{transform_indices = @transform_0, window_bounds = array<i64: 16, 128>}, {transform_indices = @transform_1, window_bounds = array<i64: 128, 8>}, {transform_indices = @transform_2, window_bounds = array<i64: 16, 8>}]} {
    %c0_i32 = arith.constant 0 : i32
    %0 = arith.cmpi eq, %arg1, %c0_i32 : i32
    %1 = arith.extui %0 : i1 to i32
    %c0_i32_0 = arith.constant 0 : i32
    %2 = arith.cmpi ne, %1, %c0_i32_0 : i32
    scf.if %2 {
      %cst_10 = arith.constant 0.000000e+00 : f32
      %12 = vector.broadcast %cst_10 : f32 to vector<16x8xf32>
      %c0_11 = arith.constant 0 : index
      %c0_12 = arith.constant 0 : index
      %13 = vector.load %arg5[%c0_11, %c0_12] : memref<16x8xf32, #tpu.memory_space<vmem>>, vector<16x8xf32>
      tpu.vector_store %arg5[%c0_11, %c0_12], %12 {strides = array<i32>} : memref<16x8xf32, #tpu.memory_space<vmem>>, vector<16x8xf32>,
    } else {
    }
    %c0 = arith.constant 0 : index
    %c0_1 = arith.constant 0 : index
    %3 = vector.load %arg5[%c0, %c0_1] : memref<16x8xf32, #tpu.memory_space<vmem>>, vector<16x8xf32>
    %c0_2 = arith.constant 0 : index
    %c0_3 = arith.constant 0 : index
    %4 = vector.load %arg2[%c0_2, %c0_3] : memref<16x128xf32, #tpu.memory_space<vmem>>, vector<16x128xf32>
    %c0_4 = arith.constant 0 : index
    %c0_5 = arith.constant 0 : index
    %5 = vector.load %arg3[%c0_4, %c0_5] : memref<128x8xf32, #tpu.memory_space<vmem>>, vector<128x8xf32>
    %cst = arith.constant dense<0.000000e+00> : vector<16x8xf32>
    %6 = tpu.matmul %4, %5, %cst {dimension_numbers = #tpu.dot_dimension_numbers<[1], [0], [0], [1], [0, 0, 1, 1], [], []>} : vector<16x128xf32>, vector<128x8xf32>, vector<16x8xf32> -> vector<16x8xf32>
    %7 = arith.addf %3, %6 : vector<16x8xf32>
    %c0_6 = arith.constant 0 : index
    %c0_7 = arith.constant 0 : index
    %8 = vector.load %arg5[%c0_6, %c0_7] : memref<16x8xf32, #tpu.memory_space<vmem>>, vector<16x8xf32>
    tpu.vector_store %arg5[%c0_6, %c0_7], %7 {strides = array<i32>} : memref<16x8xf32, #tpu.memory_space<vmem>>, vector<16x8xf32>,
    %c0_i32_8 = arith.constant 0 : i32
    %9 = arith.cmpi eq, %arg1, %c0_i32_8 : i32
    %10 = arith.extui %9 : i1 to i32
    %c0_i32_9 = arith.constant 0 : i32
    %11 = arith.cmpi ne, %10, %c0_i32_9 : i32
    scf.if %11 {
      %c0_10 = arith.constant 0 : index
      %c0_11 = arith.constant 0 : index
      %12 = vector.load %arg5[%c0_10, %c0_11] : memref<16x8xf32, #tpu.memory_space<vmem>>, vector<16x8xf32>
      %cst_12 = arith.constant 2.000000e+00 : f32
      %13 = vector.broadcast %cst_12 : f32 to vector<16x8xf32>
      %14 = arith.mulf %12, %13 : vector<16x8xf32>
      %c0_13 = arith.constant 0 : index
      %c0_14 = arith.constant 0 : index
      %15 = vector.load %arg4[%c0_13, %c0_14] : memref<16x8xf32, #tpu.memory_space<vmem>>, vector<16x8xf32>
      tpu.vector_store %arg4[%c0_13, %c0_14], %14 {strides = array<i32>} : memref<16x8xf32, #tpu.memory_space<vmem>>, vector<16x8xf32>,
    } else {
    }
    return
  }
  func.func @transform_0(%arg0: i32, %arg1: i32) -> (i32, i32) {
    %c0_i32 = arith.constant 0 : i32
    return %arg0, %arg1 : i32, i32
  }
  func.func @transform_1(%arg0: i32, %arg1: i32) -> (i32, i32) {
    %c0_i32 = arith.constant 0 : i32
    %c0_i32_0 = arith.constant 0 : i32
    return %arg1, %c0_i32 : i32, i32
  }
  func.func @transform_2(%arg0: i32, %arg1: i32) -> (i32, i32) {
    %c0_i32 = arith.constant 0 : i32
    %c0_i32_0 = arith.constant 0 : i32
    return %arg0, %c0_i32 : i32, i32
  }
}

</mosaic_0001>

<bundles_post_ra>
// kernel: tpu_custom_call.1
= control target key start
LH: loop header
LB: loop body
LE: loop exit
PB: predicated region body
PF: predicated region fallthrough
CT: control target
= control target key end

     0   :  { %vm15_vm0 = vcmask 64512   ;;  %v96_v2 = vmov 0.0   ;;  %s178_s1 = inlined_call_operand.vmem [shape: f32[128,8], index: 1, kind: input, shape index: {}]   ;;  %s179_s0 = inlined_call_operand.vmem [shape: f32[16,128], index: 0, kind: input, shape index: {}]   ;;  %s180_s2 = inlined_call_operand.vmem [shape: f32[16,8], index: 2, kind: output, shape index: {}]  }
   0x1   :  { %v37_v0 = vld [vmem:[%s178_s1 + $0x78] sm:$0xff]  ;;  %v36_v1 = vld [vmem:[%s178_s1 + $0x70] sm:$0xff]  ;;  %16 = vst.msk [vmem:[#allocation2] sm:$0xff] %vm15_vm0, %v96_v2  ;;  %v35_v3 = vld [vmem:[%s178_s1 + $0x68] sm:$0xff] }
   0x2   :  { %38 = vmatpush.msra.mxu0 %v37_v0  ;;  %79 = vmatpush.msra.mxu1 %v37_v0  ;;  %17 = vst.msk [vmem:[#allocation2 + $0x8] sm:$0xff] %vm15_vm0, %v96_v2  ;;  %v34_v4 = vld [vmem:[%s178_s1 + $0x60] sm:$0xff]  ;;  %v33_v5 = vld [vmem:[%s178_s1 + $0x58] sm:$0xff]  ;;  %v32_v6 = vld [vmem:[%s178_s1 + $0x50] sm:$0xff] }
   0x3   :  { %v31_v7 = vld [vmem:[%s178_s1 + $0x48] sm:$0xff]  ;;  %v30_v8 = vld [vmem:[%s178_s1 + $0x40] sm:$0xff]  ;;  %v29_v9 = vld [vmem:[%s178_s1 + $0x38] sm:$0xff] }
   0x4   :  { %39 = vmatpush.msra.mxu0 %v36_v1  ;;  %80 = vmatpush.msra.mxu1 %v36_v1  ;;  %v28_v10 = vld [vmem:[%s178_s1 + $0x30] sm:$0xff]  ;;  %v27_v11 = vld [vmem:[%s178_s1 + $0x28] sm:$0xff]  ;;  %v26_v12 = vld [vmem:[%s178_s1 + $0x20] sm:$0xff] }
   0x5   :  { %v25_v13 = vld [vmem:[%s178_s1 + $0x18] sm:$0xff]  ;;  %v24_v14 = vld [vmem:[%s178_s1 + $0x10] sm:$0xff]  ;;  %v23_v15 = vld [vmem:[%s178_s1 + $0x8] sm:$0xff] }
   0x6   :  { %40 = vmatpush.msra.mxu0 %v35_v3  ;;  %81 = vmatpush.msra.mxu1 %v35_v3  ;;  %v22_v16 = vld [vmem:[%s178_s1] sm:$0xff]  ;;  %v21_v18 = vld [vmem:[%s179_s0 + $0x8] sm:$0xff] }
   0x7   :  { %v20_v17 = vld [vmem:[%s179_s0] sm:$0xff] }
   0x8   :  { %41 = vmatpush.msra.mxu0 %v34_v4  ;;  %82 = vmatpush.msra.mxu1 %v34_v4  ;;  %v18_v19 = vld [vmem:[#allocation2] sm:$0xff] }
   0x9   :  { %v19_v20 = vld [vmem:[#allocation2 + $0x8] sm:$0xff] }
   0xa   :  { %42 = vmatpush.msra.mxu0 %v33_v5  ;;  %83 = vmatpush.msra.mxu1 %v33_v5 }
   0xc   :  { %43 = vmatpush.msra.mxu0 %v32_v6  ;;  %84 = vmatpush.msra.mxu1 %v32_v6 }
   0xe   :  { %44 = vmatpush.msra.mxu0 %v31_v7  ;;  %85 = vmatpush.msra.mxu1 %v31_v7 }
  0x10   :  { %45 = vmatpush.msra.mxu0 %v30_v8  ;;  %86 = vmatpush.msra.mxu1 %v30_v8 }
  0x12   :  { %46 = vmatpush.msra.mxu0 %v29_v9  ;;  %87 = vmatpush.msra.mxu1 %v29_v9 }
  0x14   :  { %47 = vmatpush.msra.mxu0 %v28_v10  ;;  %88 = vmatpush.msra.mxu1 %v28_v10 }
  0x16   :  { %48 = vmatpush.msra.mxu0 %v27_v11  ;;  %89 = vmatpush.msra.mxu1 %v27_v11 }
  0x18   :  { %49 = vmatpush.msra.mxu0 %v26_v12  ;;  %90 = vmatpush.msra.mxu1 %v26_v12 }
  0x1a   :  { %50 = vmatpush.msra.mxu0 %v25_v13  ;;  %91 = vmatpush.msra.mxu1 %v25_v13 }
  0x1c   :  { %51 = vmatpush.msra.mxu0 %v24_v14  ;;  %92 = vmatpush.msra.mxu1 %v24_v14 }
  0x1e   :  { %52 = vmatpush.msra.mxu0 %v23_v15  ;;  %93 = vmatpush.msra.mxu1 %v23_v15 }
  0x20   :  { %53 = vmatpush.msra.mxu0 %v22_v16  ;;  %94 = vmatpush.msra.mxu1 %v22_v16 }
  0x21   :  { %54 = vmatmul.f32.vlgmr.msra.gmra.mxu0 %v20_v17  ;;  %57 = vmatmul.f32.vlgmr.msra.gmra.mxu1 %v21_v18 }
  0x9e   :  { %v55_v21 = vpop.f32.mrf.mxu0  ;;  %v58_v22 = vpop.f32.mrf.mxu1 }
  0x9f   :  { %v61_v23 = vadd.f32 %v55_v21, %v18_v19  ;;  %v62_v24 = vadd.f32 %v58_v22, %v19_v20 }
  0xa1   :  { %64 = vst.msk [vmem:[#allocation2] sm:$0xff] %vm15_vm0, %v61_v23 }
  0xa2   :  { %65 = vst.msk [vmem:[#allocation2 + $0x8] sm:$0xff] %vm15_vm0, %v62_v24 }
  0xa8   :  { %v69_v25 = vld [vmem:[#allocation2] sm:$0xff] }
  0xa9   :  { %v71_v26 = vmul.f32 2.0, %v69_v25  ;;  %v70_v27 = vld [vmem:[#allocation2 + $0x8] sm:$0xff] }
  0xaa   :  { %v72_v28 = vmul.f32 2.0, %v70_v27 }
  0xab   :  { %73 = vst.msk [vmem:[%s180_s2] sm:$0xff] %vm15_vm0, %v71_v26 }
  0xac   :  { %74 = vst.msk [vmem:[%s180_s2 + $0x8] sm:$0xff] %vm15_vm0, %v72_v28 }

</bundles_post_ra>
